<compile_context>
chip_gen: v7x
topology: tpu7x:2x2x1
jax: 0.10.0
libtpu: 0.0.40
codegen_flags: <defaults>
</compile_context>

<pallas_src>
import functools

import jax
import jax.numpy as jnp
from jax import lax
from jax.experimental import pallas as pl
from jax.experimental.pallas import tpu as pltpu

_EPS = 1e-5
_LANES = 128


# ------------------------------- small helpers ------------------------------ #

def _round_up(x, m):
    return (x + m - 1) // m * m


@functools.lru_cache(maxsize=None)
def _vmem_limit_bytes():
    """Generation-aware scoped-VMEM ceiling: ~75% of physical per-core VMEM,
    clamped to [32 MiB, 100 MiB] (=> ~96 MiB on v5e/v6e, 48 MiB on v7x)."""
    cap = 64 * 1024 * 1024
    try:
        cap = int(getattr(pltpu.get_tpu_info(), "vmem_capacity_bytes", cap)) or cap
    except Exception:
        pass
    return int(min(100 * 1024 * 1024, max(32 * 1024 * 1024, (cap * 3) // 4)))


def _row_tile(ho, wo_pad, max_rows):
    """Largest divisor of `ho` whose tile_h * wo_pad row count is <= max_rows
    (exact division => no masking, no OOB reads of the image block)."""
    th = 1
    for d in range(1, ho + 1):
        if ho % d == 0 and d * wo_pad <= max_rows:
            th = d
    return th


def _pick_tile(dim, unit, max_tile):
    """Largest divisor of `dim` that is a multiple of `unit` and <= max_tile;
    falls back to the full extent (a full-dim block is always a legal block)."""
    best = None
    d = unit
    lim = min(dim, max_tile)
    while d <= lim:
        if dim % d == 0:
            best = d
        d += unit
    return best if best is not None else dim


def _build_schedule(k, stride):
    """Group conv taps by (phase, dh): one row-slab VMEM load per group, the
    dw-windows are sliced from the loaded value (review item: hoist the per-dh
    load out of the dw loop).  Returns ([( (phase, dh), [(dw, widx), ...] )...],
    max_dw) with widx = kh*k + kw matching the weight layout."""
    groups = {}
    for kh in range(k):
        for kw in range(k):
            phase = (kh % stride) * stride + (kw % stride)
            groups.setdefault((phase, kh // stride), []).append(
                (kw // stride, kh * k + kw))
    sched = sorted(groups.items())
    max_dw = max(dw for _, dws in sched for dw, _ in dws)
    return sched, max_dw


def _fold_bn(sum1, sum2, count, gamma, beta, eps):
    """Fold BN into a per-channel FMA: scale = g*rsqrt(var+eps),
    shift = b - mean*scale (variance via E[x^2]-E[x]^2 in f32)."""
    mean = sum1 / count
    var = jnp.maximum(sum2 / count - mean * mean, 0.0)
    scale = gamma * lax.rsqrt(var + eps)
    return scale, beta - mean * scale


def _phase_split(x, k, stride, padding, wo_pad, max_dw):
    """Zero-pad and (for stride>1) space-to-depth split the NHWC activation so
    every conv tap is a contiguous, stride-free window.  Width is additionally
    zero-padded so every dw-window of wo_pad output columns is in range."""
    n, h, w, c = x.shape
    s = stride
    hp, wp = h + 2 * padding, w + 2 * padding
    hq, wq = -(-hp // s), -(-wp // s)
    wq_pad = max(wq, max_dw + wo_pad)
    xp = jnp.pad(x, ((0, 0), (padding, padding + hq * s - hp),
                     (padding, padding + wq * s - wp), (0, 0)))
    xw = xp.reshape(n, hq, s, wq, s, c).transpose(0, 2, 4, 1, 3, 5)
    xw = xw.reshape(n, s * s * hq, wq, c)
    if wq_pad > wq:
        xw = jnp.pad(xw, ((0, 0), (0, 0), (0, wq_pad - wq), (0, 0)))
    return xw, hq


# ----------------------------- Pallas kernels ------------------------------ #

def _conv_stats_kernel(x_ref, w_ref, conv_ref, sum_ref, sq_ref, acc_ref, *,
                       schedule, hq, wo, wo_pad):
    """Pass 1: direct conv as accumulating MXU matmuls (taps paired along the
    contraction dim -> K=2*Cin_pad uses the full 256-deep v6e/v7x MXU) into a
    VMEM f32 scratch accumulator, plus per-image per-channel sum / sum-of-
    squares (BatchNorm batch statistics)."""
    t = pl.program_id(1)

    @pl.when(t == 0)
    def _init():
        sum_ref[...] = jnp.zeros_like(sum_ref)
        sq_ref[...] = jnp.zeros_like(sq_ref)

    m, _ = acc_ref.shape
    cin_p = x_ref.shape[-1]
    th = m // wo_pad
    h0 = t * th

    first = True
    for (phase, dh), dws in schedule:
        # one VMEM row-slab load per (phase, dh); dw windows sliced from it
        slab = x_ref[0, pl.ds(phase * hq + h0 + dh, th), :, :]
        i = 0
        while i < len(dws):
            if i + 1 < len(dws):
                (dw0, t0), (dw1, t1) = dws[i], dws[i + 1]
                lhs = jnp.concatenate(
                    [slab[:, dw0:dw0 + wo_pad, :].reshape(m, cin_p),
                     slab[:, dw1:dw1 + wo_pad, :].reshape(m, cin_p)], axis=1)
                rhs = jnp.concatenate([w_ref[t0], w_ref[t1]], axis=0)
                i += 2
            else:
                dw0, t0 = dws[i]
                lhs = slab[:, dw0:dw0 + wo_pad, :].reshape(m, cin_p)
                rhs = w_ref[t0]
                i += 1
            upd = jnp.dot(lhs, rhs, preferred_element_type=jnp.float32)
            if first:
                acc_ref[...] = upd
                first = False
            else:
                acc_ref[...] += upd

    acc = acc_ref[...]
    conv_ref[0] = acc.astype(conv_ref.dtype)
    # Exclude the padded output columns from the statistics (they may read
    # real data, so they are not guaranteed to be zero).
    if wo_pad != wo:
        col = lax.broadcasted_iota(jnp.int32, (m, 1), 0) % wo_pad
        acc = jnp.where(col < wo, acc, 0.0)
    sum_ref[0] += jnp.sum(acc, axis=0, keepdims=True)
    sq_ref[0] += jnp.sum(acc * acc, axis=0, keepdims=True)


def _bn_apply_kernel(y_ref, scale_ref, shift_ref, o_ref, *, relu):
    """Pass 2: y = conv*scale + shift (+ReLU).  Reads the flattened lane/
    sublane-dense conv output, writes the (N, Ho, Wo, Cp) activation."""
    _, th, wo, cp = o_ref.shape
    wo_pad = y_ref.shape[1] // th
    y = y_ref[0].astype(jnp.float32) * scale_ref[...] + shift_ref[...]
    if relu:
        y = jnp.maximum(y, 0.0)
    o_ref[0] = y.reshape(th, wo_pad, cp)[:, :wo, :].astype(o_ref.dtype)


def _bn_apply_add_relu_kernel(y_ref, scale_ref, shift_ref, r_ref, o_ref):
    """Pass 2 with residual add + ReLU (end of a ResidualBlock)."""
    _, th, wo, cp = o_ref.shape
    wo_pad = y_ref.shape[1] // th
    y = y_ref[0].astype(jnp.float32) * scale_ref[...] + shift_ref[...]
    y = y.reshape(th, wo_pad, cp)[:, :wo, :] + r_ref[0].astype(jnp.float32)
    o_ref[0] = jnp.maximum(y, 0.0).astype(o_ref.dtype)


def _bn_stats_kernel(x_ref, s1_ref, s2_ref):
    """Standalone BatchNorm2d pass 1 (NCHW layout, no transpose): per-image,
    per-channel sum / sum-of-squares accumulated across spatial tiles."""
    @pl.when(pl.program_id(2) == 0)
    def _init():
        s1_ref[...] = jnp.zeros_like(s1_ref)
        s2_ref[...] = jnp.zeros_like(s2_ref)

    x = x_ref[...].astype(jnp.float32)
    s1_ref[...] += jnp.sum(x, axis=-1, keepdims=True)
    s2_ref[...] += jnp.sum(x * x, axis=-1, keepdims=True)


def _bn_apply_nchw_kernel(x_ref, scale_ref, shift_ref, o_ref):
    """Standalone BatchNorm2d pass 2: y = x*scale + shift (per-channel FMA)."""
    y = x_ref[...].astype(jnp.float32) * scale_ref[...] + shift_ref[...]
    o_ref[...] = y.astype(o_ref.dtype)


# ------------------------ fused conv + BN (+ReLU/res) ----------------------- #

def conv_bn(x, w_oihw, gamma, beta, *, stride, padding, relu,
            residual=None, compute_dtype=jnp.bfloat16,
            conv_tile_rows=256, apply_tile_rows=1024):
    """Fused Conv2d (no bias) -> BatchNorm2d (training-mode batch statistics)
    -> optional residual add -> optional ReLU.

    x: (N, H, W, Cin_pad) activations, channels already zero-padded to 128.
    Returns (N, Ho, Wo, Cout_pad) in `compute_dtype`.
    """
    n_img, h, w_sp, cin_p = x.shape
    cout, cin, k, _ = w_oihw.shape
    cp = _round_up(cout, _LANES)

    ho = (h + 2 * padding - k) // stride + 1
    wo = (w_sp + 2 * padding - k) // stride + 1
    wo_pad = _round_up(wo, 8)
    sched, max_dw = _build_schedule(k, stride)

    # Weights -> (K*K, Cin_pad, Cout_pad), zero-padded => lane-dense operands.
    wk = jnp.transpose(w_oihw, (2, 3, 1, 0)).reshape(k * k, cin, cout)
    wk = jnp.pad(wk, ((0, 0), (0, cin_p - cin), (0, cp - cout)))
    wk = wk.astype(compute_dtype)

    xw, hq = _phase_split(x.astype(compute_dtype), k, stride, padding,
                          wo_pad, max_dw)

    th1 = _row_tile(ho, wo_pad, conv_tile_rows)    # matmul pass (acc cap)
    th2 = _row_tile(ho, wo_pad, apply_tile_rows)   # elementwise pass (big tile)
    m1 = th1 * wo_pad
    vmem = _vmem_limit_bytes()
    act_b = jnp.dtype(compute_dtype).itemsize

    img_spec = pl.BlockSpec((1,) + xw.shape[1:], lambda i, j: (i, 0, 0, 0))
    w_spec = pl.BlockSpec(wk.shape, lambda i, j: (0, 0, 0))
    flat1_spec = pl.BlockSpec((1, m1, cp), lambda i, j: (i, j, 0))
    stat_spec = pl.BlockSpec((1, 1, cp), lambda i, j: (i, 0, 0))

    flops = 2 * n_img * ho * wo_pad * k * k * cin_p * cp
    p1_bytes = int(xw.size * xw.dtype.itemsize + wk.size * wk.dtype.itemsize
                   + n_img * ho * wo_pad * cp * act_b + 2 * n_img * cp * 4)

    conv_out, s1, s2 = pl.pallas_call(
        functools.partial(_conv_stats_kernel, schedule=sched, hq=hq,
                          wo=wo, wo_pad=wo_pad),
        grid=(n_img, ho // th1),
        in_specs=[img_spec, w_spec],
        out_specs=[flat1_spec, stat_spec, stat_spec],
        out_shape=[jax.ShapeDtypeStruct((n_img, ho * wo_pad, cp), compute_dtype),
                   jax.ShapeDtypeStruct((n_img, 1, cp), jnp.float32),
                   jax.ShapeDtypeStruct((n_img, 1, cp), jnp.float32)],
        scratch_shapes=[pltpu.VMEM((m1, cp), jnp.float32)],
        compiler_params=pltpu.CompilerParams(
            # per-image stat accumulators -> image axis is megacore-parallel
            dimension_semantics=("parallel", "arbitrary"),
            vmem_limit_bytes=vmem),
        cost_estimate=pl.CostEstimate(flops=int(flops), transcendentals=0,
                                      bytes_accessed=p1_bytes),
    )(xw, wk)

    gamma_p = jnp.pad(gamma.astype(jnp.float32), (0, cp - cout))
    beta_p = jnp.pad(beta.astype(jnp.float32), (0, cp - cout))
    # Per-image partial sums reduced in f32; divisor counts only REAL elements
    # (padded channels have gamma=0 -> scale=0; padded columns were masked).
    scale, shift = _fold_bn(jnp.sum(s1[:, 0, :], axis=0),
                            jnp.sum(s2[:, 0, :], axis=0),
                            float(n_img * ho * wo), gamma_p, beta_p, _EPS)
    scale = scale.reshape(1, cp)
    shift = shift.reshape(1, cp)

    flat2_spec = pl.BlockSpec((1, th2 * wo_pad, cp), lambda i, j: (i, j, 0))
    out_spec = pl.BlockSpec((1, th2, wo, cp), lambda i, j: (i, j, 0, 0))
    chan_spec = pl.BlockSpec((1, cp), lambda i, j: (0, 0))

    in_specs = [flat2_spec, chan_spec, chan_spec]
    args = [conv_out, scale, shift]
    if residual is None:
        kernel = functools.partial(_bn_apply_kernel, relu=relu)
        io_alias = {}
    else:
        kernel = _bn_apply_add_relu_kernel
        in_specs.append(out_spec)
        args.append(residual)
        io_alias = {3: 0}  # write the block output into the residual buffer

    p2_bytes = int(n_img * ho * wo_pad * cp * act_b
                   + n_img * ho * wo * cp * act_b
                   * (2 if residual is not None else 1))
    out = pl.pallas_call(
        kernel,
        grid=(n_img, ho // th2),
        in_specs=in_specs,
        out_specs=out_spec,
        out_shape=jax.ShapeDtypeStruct((n_img, ho, wo, cp), compute_dtype),
        input_output_aliases=io_alias,
        compiler_params=pltpu.CompilerParams(
            dimension_semantics=("parallel", "parallel"),
            vmem_limit_bytes=vmem),
        cost_estimate=pl.CostEstimate(flops=int(4 * n_img * ho * wo * cp),
                                      transcendentals=0,
                                      bytes_accessed=p2_bytes),
    )(*args)
    return out


# --------------------- standalone BatchNorm2d (the spec) -------------------- #

def batchnorm2d(x_nchw, gamma, beta, *, eps=_EPS, max_c_tile=256,
                max_hw_tile=2048):
    """Training-mode BatchNorm2d forward (batch statistics, unbiased=False).
    Works directly on the NCHW layout (channels on sublanes, H*W on lanes):
    no transpose / pad HBM round trip.  Two tiled Pallas passes: per-(image,
    channel) partial sum / sum-of-squares, then a fused scale/shift apply."""
    n, c, h, w = x_nchw.shape
    hw = h * w
    x3 = x_nchw.reshape(n, c, hw)                  # free reshape (no copy)

    c_tile = _pick_tile(c, 8, max_c_tile)
    hw_tile = _pick_tile(hw, _LANES, max_hw_tile)
    grid = (n, c // c_tile, hw // hw_tile)
    vmem = _vmem_limit_bytes()

    x_spec = pl.BlockSpec((1, c_tile, hw_tile), lambda i, j, k: (i, j, k))
    stat_spec = pl.BlockSpec((1, c_tile, 1), lambda i, j, k: (i, j, 0))

    s1, s2 = pl.pallas_call(
        _bn_stats_kernel,
        grid=grid,
        in_specs=[x_spec],
        out_specs=[stat_spec, stat_spec],
        out_shape=[jax.ShapeDtypeStruct((n, c, 1), jnp.float32)] * 2,
        compiler_params=pltpu.CompilerParams(
            # image & channel axes carry independent accumulators -> parallel
            dimension_semantics=("parallel", "parallel", "arbitrary"),
            vmem_limit_bytes=vmem),
        cost_estimate=pl.CostEstimate(flops=int(3 * n * c * hw),
                                      transcendentals=0,
                                      bytes_accessed=int(n * c * hw * 4)),
    )(x3)

    scale, shift = _fold_bn(jnp.sum(s1[..., 0], axis=0),
                            jnp.sum(s2[..., 0], axis=0),
                            float(n * hw),
                            gamma.astype(jnp.float32),
                            beta.astype(jnp.float32), eps)
    scale3 = scale.reshape(1, c, 1)
    shift3 = shift.reshape(1, c, 1)
    chan_spec = pl.BlockSpec((1, c_tile, 1), lambda i, j, k: (0, j, 0))

    y3 = pl.pallas_call(
        _bn_apply_nchw_kernel,
        grid=grid,
        in_specs=[x_spec, chan_spec, chan_spec],
        out_specs=x_spec,
        out_shape=jax.ShapeDtypeStruct((n, c, hw), x_nchw.dtype),
        compiler_params=pltpu.CompilerParams(
            dimension_semantics=("parallel", "parallel", "parallel"),
            vmem_limit_bytes=vmem),
        cost_estimate=pl.CostEstimate(flops=int(2 * n * c * hw),
                                      transcendentals=0,
                                      bytes_accessed=int(2 * n * c * hw * 4)),
    )(x3, scale3, shift3)
    return y3.reshape(n, c, h, w)


# --------------------------- parameter construction ------------------------ #

def _init_conv_weight(key, cout, cin, k):
    sf = 1.0 / float(cin * k * k) ** 0.5
    return jax.random.uniform(key, (cout, cin, k, k), dtype=jnp.float32,
                              minval=-sf, maxval=sf)


def init_residual_block(key, in_feats, out_feats, first_stride):
    k1, k2, k3 = jax.random.split(key, 3)
    p = {
        "first_stride": first_stride,
        "conv1_w": _init_conv_weight(k1, out_feats, in_feats, 3),
        "bn1_g": jnp.ones(out_feats, jnp.float32),
        "bn1_b": jnp.zeros(out_feats, jnp.float32),
        "conv2_w": _init_conv_weight(k2, out_feats, out_feats, 3),
        "bn2_g": jnp.ones(out_feats, jnp.float32),
        "bn2_b": jnp.zeros(out_feats, jnp.float32),
    }
    if not (first_stride == 1 and in_feats == out_feats):
        p["convr_w"] = _init_conv_weight(k3, out_feats, in_feats, 1)
        p["bnr_g"] = jnp.ones(out_feats, jnp.float32)
        p["bnr_b"] = jnp.zeros(out_feats, jnp.float32)
    return p


def init_block_group(key, n_blocks, in_feats, out_feats, first_stride):
    keys = jax.random.split(key, n_blocks)
    blocks = [init_residual_block(keys[0], in_feats, out_feats, first_stride)]
    for i in range(1, n_blocks):
        blocks.append(init_residual_block(keys[i], out_feats, out_feats, 1))
    return blocks


# ------------------------------- forward pass ------------------------------ #

def residual_block_fwd(x, p, compute_dtype):
    s = p["first_stride"]
    left = conv_bn(x, p["conv1_w"], p["bn1_g"], p["bn1_b"],
                   stride=s, padding=1, relu=True, compute_dtype=compute_dtype)
    if "convr_w" in p:
        right = conv_bn(x, p["convr_w"], p["bnr_g"], p["bnr_b"],
                        stride=s, padding=0, relu=False,
                        compute_dtype=compute_dtype)
    else:
        right = x
    return conv_bn(left, p["conv2_w"], p["bn2_g"], p["bn2_b"],
                   stride=1, padding=1, relu=True, residual=right,
                   compute_dtype=compute_dtype)


def block_group_fwd(x_nhwc, blocks, compute_dtype=jnp.bfloat16):
    n, h, w, c = x_nhwc.shape
    cp = _round_up(c, _LANES)
    x = jnp.pad(x_nhwc, ((0, 0), (0, 0), (0, 0), (0, cp - c)))
    x = x.astype(compute_dtype)
    for p in blocks:
        x = residual_block_fwd(x, p, compute_dtype)
    c_out = blocks[-1]["conv1_w"].shape[0]
    return x[..., :c_out].astype(jnp.float32)


# --------------------------- pure-JAX reference ----------------------------- #

def _ref_conv(x, w_oihw, stride, padding):
    return lax.conv_general_dilated(
        x, jnp.transpose(w_oihw, (2, 3, 1, 0)),
        window_strides=(stride, stride),
        padding=[(padding, padding), (padding, padding)],
        dimension_numbers=("NHWC", "HWIO", "NHWC"),
        precision=lax.Precision.HIGHEST)


def _ref_bn(y, g, b):
    mean = jnp.mean(y, axis=(0, 1, 2), keepdims=True)
    var = jnp.mean((y - mean) ** 2, axis=(0, 1, 2), keepdims=True)
    return (y - mean) / jnp.sqrt(var + _EPS) * g.reshape(1, 1, 1, -1) \
        + b.reshape(1, 1, 1, -1)


def _ref_block(x, p):
    s = p["first_stride"]
    left = jnp.maximum(
        _ref_bn(_ref_conv(x, p["conv1_w"], s, 1), p["bn1_g"], p["bn1_b"]), 0.0)
    left = _ref_bn(_ref_conv(left, p["conv2_w"], 1, 1), p["bn2_g"], p["bn2_b"])
    if "convr_w" in p:
        right = _ref_bn(_ref_conv(x, p["convr_w"], s, 0),
                        p["bnr_g"], p["bnr_b"])
    else:
        right = x
    return jnp.maximum(left + right, 0.0)


def block_group_ref(x_nhwc, blocks):
    for p in blocks:
        x_nhwc = _ref_block(x_nhwc, p)
    return x_nhwc


# ----------------------------------- main ----------------------------------- #

if __name__ == "__main__":
    key = jax.random.PRNGKey(0)
    k_x, k_p, k_g, k_b = jax.random.split(key, 4)

    x_nchw = jax.random.normal(k_x, (2, 4, 16, 16), dtype=jnp.float32)

    # --- standalone BatchNorm2d (the spec module, training mode) ------------ #
    gamma = jax.random.uniform(k_g, (4,), jnp.float32, 0.5, 1.5)
    beta = jax.random.uniform(k_b, (4,), jnp.float32, -0.5, 0.5)
    bn_fn = jax.jit(lambda xx: batchnorm2d(xx, gamma, beta))
    bn_out = jax.block_until_ready(bn_fn(x_nchw))

    mean = jnp.mean(x_nchw, axis=(0, 2, 3), keepdims=True)
    var = jnp.mean((x_nchw - mean) ** 2, axis=(0, 2, 3), keepdims=True)
    bn_ref = (x_nchw - mean) / jnp.sqrt(var + _EPS) \
        * gamma.reshape(1, -1, 1, 1) + beta.reshape(1, -1, 1, 1)
    assert bn_out.shape == x_nchw.shape, bn_out.shape
    assert jnp.allclose(bn_out, bn_ref, atol=1e-4, rtol=1e-4), \
        float(jnp.max(jnp.abs(bn_out - bn_ref)))

    # --- fused ResNet BlockGroup (conv -> BN -> ReLU / residual) ------------ #
    blocks = init_block_group(k_p, n_blocks=2, in_feats=4, out_feats=8,
                              first_stride=2)
    x_nhwc = jnp.transpose(x_nchw, (0, 2, 3, 1))
    ref_nchw = jnp.transpose(block_group_ref(x_nhwc, blocks), (0, 3, 1, 2))

    # exact-precision path (f32 MXU) — must match the reference tightly
    fwd_f32 = jax.jit(lambda xx: block_group_fwd(xx, blocks, jnp.float32))
    out_f32 = jnp.transpose(jax.block_until_ready(fwd_f32(x_nhwc)),
                            (0, 3, 1, 2))
    assert out_f32.shape == (2, 8, 8, 8), out_f32.shape
    assert jnp.allclose(out_f32, ref_nchw, atol=1e-4, rtol=1e-4), \
        float(jnp.max(jnp.abs(out_f32 - ref_nchw)))

    # performance path (bf16 MXU operands + bf16 inter-pass activations,
    # f32 accumulation / BN statistics)
    fwd_bf16 = jax.jit(lambda xx: block_group_fwd(xx, blocks, jnp.bfloat16))
    out_bf16 = jnp.transpose(jax.block_until_ready(fwd_bf16(x_nhwc)),
                             (0, 3, 1, 2))
    assert jnp.allclose(out_bf16, ref_nchw, atol=1e-1, rtol=1e-1), \
        float(jnp.max(jnp.abs(out_bf16 - ref_nchw)))

    print("KERNEL_OK")
</pallas_src>

<mosaic_0001>
module attributes {stable_mosaic.version = 11 : i64} {
  func.func @_bn_stats_kernel(%arg0: i32, %arg1: i32, %arg2: i32, %arg3: memref<1x4x256xf32, #tpu.memory_space<vmem>>, %arg4: memref<1x4x1xf32, #tpu.memory_space<vmem>>, %arg5: memref<1x4x1xf32, #tpu.memory_space<vmem>>) attributes {dimension_semantics = [#tpu.dimension_semantics<parallel>, #tpu.dimension_semantics<parallel>, #tpu.dimension_semantics<arbitrary>], iteration_bounds = array<i64: 2, 1, 1>, scalar_prefetch = 0 : i64, scratch_operands = 0 : i64, tpu.core_type = #tpu.core_type<tc>, window_params = [{transform_indices = @transform_0, window_bounds = array<i64: 1, 4, 256>}, {transform_indices = @transform_1, window_bounds = array<i64: 1, 4, 1>}, {transform_indices = @transform_2, window_bounds = array<i64: 1, 4, 1>}]} {
    %c0_i32 = arith.constant 0 : i32
    %0 = arith.cmpi eq, %arg2, %c0_i32 : i32
    %1 = arith.extui %0 : i1 to i32
    %c0_i32_0 = arith.constant 0 : i32
    %2 = arith.cmpi ne, %1, %c0_i32_0 : i32
    scf.if %2 {
      %cst_16 = arith.constant 0.000000e+00 : f32
      %15 = vector.broadcast %cst_16 : f32 to vector<1x4x1xf32>
      %c0_17 = arith.constant 0 : index
      %c0_18 = arith.constant 0 : index
      %c0_19 = arith.constant 0 : index
      %16 = vector.load %arg4[%c0_17, %c0_18, %c0_19] : memref<1x4x1xf32, #tpu.memory_space<vmem>>, vector<1x4x1xf32>
      tpu.vector_store %arg4[%c0_17, %c0_18, %c0_19], %15 {strides = array<i32>} : memref<1x4x1xf32, #tpu.memory_space<vmem>>, vector<1x4x1xf32>,
      %cst_20 = arith.constant 0.000000e+00 : f32
      %17 = vector.broadcast %cst_20 : f32 to vector<1x4x1xf32>
      %c0_21 = arith.constant 0 : index
      %c0_22 = arith.constant 0 : index
      %c0_23 = arith.constant 0 : index
      %18 = vector.load %arg5[%c0_21, %c0_22, %c0_23] : memref<1x4x1xf32, #tpu.memory_space<vmem>>, vector<1x4x1xf32>
      tpu.vector_store %arg5[%c0_21, %c0_22, %c0_23], %17 {strides = array<i32>} : memref<1x4x1xf32, #tpu.memory_space<vmem>>, vector<1x4x1xf32>,
    } else {
    }
    %c0 = arith.constant 0 : index
    %c0_1 = arith.constant 0 : index
    %c0_2 = arith.constant 0 : index
    %3 = vector.load %arg3[%c0, %c0_1, %c0_2] : memref<1x4x256xf32, #tpu.memory_space<vmem>>, vector<1x4x256xf32>
    %c0_3 = arith.constant 0 : index
    %c0_4 = arith.constant 0 : index
    %c0_5 = arith.constant 0 : index
    %4 = vector.load %arg4[%c0_3, %c0_4, %c0_5] : memref<1x4x1xf32, #tpu.memory_space<vmem>>, vector<1x4x1xf32>
    %cst = arith.constant dense<0.000000e+00> : vector<1x4xf32>
    %5 = vector.multi_reduction <add>, %3, %cst [2] : vector<1x4x256xf32> to vector<1x4xf32>
    %6 = vector.shape_cast %5 : vector<1x4xf32> to vector<1x4x1xf32>
    %7 = arith.addf %4, %6 : vector<1x4x1xf32>
    %c0_6 = arith.constant 0 : index
    %c0_7 = arith.constant 0 : index
    %c0_8 = arith.constant 0 : index
    %8 = vector.load %arg4[%c0_6, %c0_7, %c0_8] : memref<1x4x1xf32, #tpu.memory_space<vmem>>, vector<1x4x1xf32>
    tpu.vector_store %arg4[%c0_6, %c0_7, %c0_8], %7 {strides = array<i32>} : memref<1x4x1xf32, #tpu.memory_space<vmem>>, vector<1x4x1xf32>,
    %c0_9 = arith.constant 0 : index
    %c0_10 = arith.constant 0 : index
    %c0_11 = arith.constant 0 : index
    %9 = vector.load %arg5[%c0_9, %c0_10, %c0_11] : memref<1x4x1xf32, #tpu.memory_space<vmem>>, vector<1x4x1xf32>
    %10 = arith.mulf %3, %3 : vector<1x4x256xf32>
    %cst_12 = arith.constant dense<0.000000e+00> : vector<1x4xf32>
    %11 = vector.multi_reduction <add>, %10, %cst_12 [2] : vector<1x4x256xf32> to vector<1x4xf32>
    %12 = vector.shape_cast %11 : vector<1x4xf32> to vector<1x4x1xf32>
    %13 = arith.addf %9, %12 : vector<1x4x1xf32>
    %c0_13 = arith.constant 0 : index
    %c0_14 = arith.constant 0 : index
    %c0_15 = arith.constant 0 : index
    %14 = vector.load %arg5[%c0_13, %c0_14, %c0_15] : memref<1x4x1xf32, #tpu.memory_space<vmem>>, vector<1x4x1xf32>
    tpu.vector_store %arg5[%c0_13, %c0_14, %c0_15], %13 {strides = array<i32>} : memref<1x4x1xf32, #tpu.memory_space<vmem>>, vector<1x4x1xf32>,
    return
  }
  func.func @transform_0(%arg0: i32, %arg1: i32, %arg2: i32) -> (i32, i32, i32) {
    %c0_i32 = arith.constant 0 : i32
    return %arg0, %arg1, %arg2 : i32, i32, i32
  }
  func.func @transform_1(%arg0: i32, %arg1: i32, %arg2: i32) -> (i32, i32, i32) {
    %c0_i32 = arith.constant 0 : i32
    %c0_i32_0 = arith.constant 0 : i32
    return %arg0, %arg1, %c0_i32 : i32, i32, i32
  }
  func.func @transform_2(%arg0: i32, %arg1: i32, %arg2: i32) -> (i32, i32, i32) {
    %c0_i32 = arith.constant 0 : i32
    %c0_i32_0 = arith.constant 0 : i32
    return %arg0, %arg1, %c0_i32 : i32, i32, i32
  }
}

module attributes {stable_mosaic.version = 11 : i64} {
  func.func @_bn_apply_nchw_kernel(%arg0: i32, %arg1: i32, %arg2: i32, %arg3: memref<1x4x256xf32, #tpu.memory_space<vmem>>, %arg4: memref<1x4x1xf32, #tpu.memory_space<vmem>>, %arg5: memref<1x4x1xf32, #tpu.memory_space<vmem>>, %arg6: memref<1x4x256xf32, #tpu.memory_space<vmem>>) attributes {dimension_semantics = [#tpu.dimension_semantics<parallel>, #tpu.dimension_semantics<parallel>, #tpu.dimension_semantics<parallel>], iteration_bounds = array<i64: 2, 1, 1>, scalar_prefetch = 0 : i64, scratch_operands = 0 : i64, tpu.core_type = #tpu.core_type<tc>, window_params = [{transform_indices = @transform_0, window_bounds = array<i64: 1, 4, 256>}, {transform_indices = @transform_1, window_bounds = array<i64: 1, 4, 1>}, {transform_indices = @transform_2, window_bounds = array<i64: 1, 4, 1>}, {transform_indices = @transform_3, window_bounds = array<i64: 1, 4, 256>}]} {
    %c0 = arith.constant 0 : index
    %c0_0 = arith.constant 0 : index
    %c0_1 = arith.constant 0 : index
    %0 = vector.load %arg3[%c0, %c0_0, %c0_1] : memref<1x4x256xf32, #tpu.memory_space<vmem>>, vector<1x4x256xf32>
    %c0_2 = arith.constant 0 : index
    %c0_3 = arith.constant 0 : index
    %c0_4 = arith.constant 0 : index
    %1 = vector.load %arg4[%c0_2, %c0_3, %c0_4] : memref<1x4x1xf32, #tpu.memory_space<vmem>>, vector<1x4x1xf32>
    %2 = vector.broadcast %1 : vector<1x4x1xf32> to vector<1x4x256xf32>
    %3 = arith.mulf %0, %2 : vector<1x4x256xf32>
    %c0_5 = arith.constant 0 : index
    %c0_6 = arith.constant 0 : index
    %c0_7 = arith.constant 0 : index
    %4 = vector.load %arg5[%c0_5, %c0_6, %c0_7] : memref<1x4x1xf32, #tpu.memory_space<vmem>>, vector<1x4x1xf32>
    %5 = vector.broadcast %4 : vector<1x4x1xf32> to vector<1x4x256xf32>
    %6 = arith.addf %3, %5 : vector<1x4x256xf32>
    %c0_8 = arith.constant 0 : index
    %c0_9 = arith.constant 0 : index
    %c0_10 = arith.constant 0 : index
    %7 = vector.load %arg6[%c0_8, %c0_9, %c0_10] : memref<1x4x256xf32, #tpu.memory_space<vmem>>, vector<1x4x256xf32>
    tpu.vector_store %arg6[%c0_8, %c0_9, %c0_10], %6 {strides = array<i32>} : memref<1x4x256xf32, #tpu.memory_space<vmem>>, vector<1x4x256xf32>,
    return
  }
  func.func @transform_0(%arg0: i32, %arg1: i32, %arg2: i32) -> (i32, i32, i32) {
    %c0_i32 = arith.constant 0 : i32
    return %arg0, %arg1, %arg2 : i32, i32, i32
  }
  func.func @transform_1(%arg0: i32, %arg1: i32, %arg2: i32) -> (i32, i32, i32) {
    %c0_i32 = arith.constant 0 : i32
    %c0_i32_0 = arith.constant 0 : i32
    %c0_i32_1 = arith.constant 0 : i32
    return %c0_i32, %arg1, %c0_i32_0 : i32, i32, i32
  }
  func.func @transform_2(%arg0: i32, %arg1: i32, %arg2: i32) -> (i32, i32, i32) {
    %c0_i32 = arith.constant 0 : i32
    %c0_i32_0 = arith.constant 0 : i32
    %c0_i32_1 = arith.constant 0 : i32
    return %c0_i32, %arg1, %c0_i32_0 : i32, i32, i32
  }
  func.func @transform_3(%arg0: i32, %arg1: i32, %arg2: i32) -> (i32, i32, i32) {
    %c0_i32 = arith.constant 0 : i32
    return %arg0, %arg1, %arg2 : i32, i32, i32
  }
}

</mosaic_0001>

<bundles_post_ra>
// kernel: _lambda_.2
= control target key start
LH: loop header
LB: loop body
LE: loop exit
PB: predicated region body
PF: predicated region fallthrough
CT: control target
= control target key end

     0   :  { %s456_s9 = smov 0   ;;  %s458_s10 = smov 0   ;;  %s496_s0 = inlined_call_operand.vmem [shape: f32[2,4,256], index: 0, kind: input, shape index: {}]   ;;  %s497_s1 = inlined_call_operand.vmem [shape: f32[2,4,1], index: 1, kind: output, shape index: {0}]   ;;  %s498_s2 = inlined_call_operand.vmem [shape: f32[2,4,1], index: 2, kind: output, shape index: {1}]  }
   0x1   :  { %s460_s11 = smov 0  }
   0x2 LB: > { %s32_s12 = sadd.s32 1, %s434_s10  ;;  %p382_p0 = scmp.ge.s32.totalorder %s438_s11, 1  ;;  %s438_s11 = sphi %s460_s11, %s13_s11   ;;  %s434_s10 = sphi %s458_s10, %s500_s10   ;;  %s430_s9 = sphi %s456_s9, %s499_s9  }
   0x3   : > { %p34_p1 = scmp.ge.s32.totalorder %s32_s12, 2  ;;  %p151_p2 = scmp.lt.s32.totalorder %s438_s11, 3 }
   0x5   : > { %s502_s12 = smov (%p34_p1, %s32_s12), 0  ;;  %p152_p3 = pnand %p382_p0, %p151_p2 }
   0x6   : > { %p191_p4 = scmp.lt.s32.totalorder (!%p152_p3), %s430_s9, 1  ;;  %vm222_vm0 = vcmask (!%p152_p3), 3072   ;;  %vm230_vm1 = vcmask (!%p152_p3), 1043456   ;;  %v440_v1 = vmov (!%p152_p3), 0.0  }
   0x7   : > { %155 = sbr.rel (%p152_p3) target bundleno = 172 (0xac), region = 24 }
   0xe   : > { %s504_s9 = smov (!%p191_p4, %s430_s9), 1 }
   0xf   : > { %s389_s13 = sshll.u32 %s504_s9, 3  ;;  %s385_s14 = sshll.u32 %s504_s9, 2 }
  0x10   : > { %s202_s17 = scalar_lea.vmem %s496_s0, %s389_s13  ;;  %s210_s20 = scalar_lea.vmem %s497_s1, %s385_s14 }
  0x11   : > { %v225_v0 = vld [vmem:[%s202_s17] sm:$0xff]  ;;  %223 = vst.msk [vmem:[%s210_s20] sm:$0xf] %vm222_vm0, %v440_v1  ;;  %s217_s23 = scalar_lea.vmem %s498_s2, %s385_s14 }
  0x12   : > { %v228_v2 = vcombine.high %v225_v0, %v225_v0  ;;  %v231_v3 = vsel %vm230_vm1, %v225_v0, 0.0  ;;  %v240_v4 = vmul.f32 %v225_v0, %v225_v0  ;;  %224 = vst.msk [vmem:[%s217_s23] sm:$0xf] %vm222_vm0, %v440_v1 }
  0x14   : > { %v232_v5 = vsel %vm230_vm1, %v228_v2, 0.0  ;;  %v242_v6 = vcombine.high %v240_v4, %v240_v4  ;;  %v244_v7 = vsel %vm230_vm1, %v240_v4, 0.0 }
  0x15   : > { %v233_v8 = vadd.f32 %v232_v5, %v231_v3 }
  0x16   : > { %v245_v9 = vsel %vm230_vm1, %v242_v6, 0.0 }
  0x17   : > { %234 = vadd.xlane.f32.xlu0 %v233_v8  ;;  %v246_v10 = vadd.f32 %v245_v9, %v244_v7 }
  0x18   : > { %v226_v11 = vld [vmem:[%s210_s20] sm:$0xf] }
  0x19   : > { %v239_v14 = vld [vmem:[%s217_s23] sm:$0xf] }
  0x1b   : > { %247 = vadd.xlane.f32.xlu0 %v246_v10 }
  0xa4   : > { %v235_v12 = vpop.xlane.xlu0 %234 }
  0xa5   : > { %v236_v13 = vadd.f32 %v235_v12, %v226_v11 }
  0xa7   : > { %238 = vst.msk [vmem:[%s210_s20] sm:$0xf] %vm222_vm0, %v236_v13 }
  0xa8   : > { %v248_v15 = vpop.xlane.xlu0 %247 }
  0xa9   : > { %v249_v16 = vadd.f32 %v248_v15, %v239_v14 }
  0xab   : > { %250 = vst.msk [vmem:[%s217_s23] sm:$0xf] %vm222_vm0, %v249_v16 }
  0xac PF: > { %s13_s11 = sadd.s32 1, %s438_s11   ;;  %s499_s9 = smov %s434_s10 }
  0xad   : > { %p10_p5 = scmp.ge.s32.totalorder %s13_s11, 4   ;;  %s500_s10 = smov %s502_s12 }
  0xaf   :  { %12 = sbr.rel (!%p10_p5) target bundleno = 2 (0x2), region = 70 }

// kernel: _lambda_.3
= control target key start
LH: loop header
LB: loop body
LE: loop exit
PB: predicated region body
PF: predicated region fallthrough
CT: control target
= control target key end

     0   :  { %s535_s12 = smov 0   ;;  %s537_s13 = smov 0   ;;  %s574_s0 = inlined_call_operand.vmem [shape: f32[2,4,256], index: 0, kind: input, shape index: {}]   ;;  %s575_s1 = inlined_call_operand.vmem [shape: f32[1,4,1], index: 1, kind: input, shape index: {}]   ;;  %s576_s2 = inlined_call_operand.vmem [shape: f32[1,4,1], index: 2, kind: input, shape index: {}]   ;;  %s577_s3 = inlined_call_operand.vmem [shape: f32[2,4,256], index: 3, kind: output, shape index: {}]  }
   0x1   :  { %s539_s14 = smov 0  }
   0x2 LB: > { %s32_s15 = sadd.s32 1, %s507_s13  ;;  %p453_p0 = scmp.ge.s32.totalorder %s511_s14, 1  ;;  %s511_s14 = sphi %s539_s14, %s13_s14   ;;  %s507_s13 = sphi %s537_s13, %s579_s13   ;;  %s503_s12 = sphi %s535_s12, %s578_s12  }
   0x3   : > { %p34_p1 = scmp.ge.s32.totalorder %s32_s15, 2  ;;  %p191_p2 = scmp.lt.s32.totalorder %s511_s14, 3 }
   0x5   : > { %s581_s15 = smov (%p34_p1, %s32_s15), 0  ;;  %p192_p3 = pnand %p453_p0, %p191_p2 }
   0x6   : > { %v276_v0 = vld [vmem:[%s575_s1] sm:$0xf] (!%p192_p3)  ;;  %v513_v1 = vmov (!%p192_p3), 0   ;;  %p240_p4 = scmp.lt.s32.totalorder (!%p192_p3), %s503_s12, 1  ;;  %v514_v3 = vmov (!%p192_p3), 839922192   ;;  %v284_v5 = vlaneseq (!%p192_p3) }
   0x7   : > { %195 = sbr.rel (%p192_p3) target bundleno = 145 (0x91), region = 32  ;;  %488 = vset.pattern.permute.xlu0 (!%p192_p3), %v513_v1  ;;  %v290_v2 = vld [vmem:[%s576_s2] sm:$0xf] (!%p192_p3)  ;;  %v282_v4 = vunpack.c.l.s4 (!%p192_p3), %v514_v3 }
   0x8   : > { %279 = vperm.xlu0 (!%p192_p3), %488, %v276_v0   ;;  %v285_v7 = vshrl.u32 (!%p192_p3), %v284_v5, 7 }
   0x9   : > { %v283_v6 = vunpack.c.0.s8 (!%p192_p3), %v282_v4 }
   0xb   : > { %v286_v8 = vsub.s32 (!%p192_p3), %v283_v6, %v285_v7 }
   0xc   : > { %293 = vperm.xlu0 (!%p192_p3), %488, %v290_v2  }
   0xe   : > { %s583_s12 = smov (!%p240_p4, %s503_s12), 1 }
   0xf   : > { %s460_s20 = sshll.u32 %s583_s12, 3 }
  0x10   : > { %s251_s23 = scalar_lea.vmem %s574_s0, %s460_s20  ;;  %s273_s26 = scalar_lea.vmem %s577_s3, %s460_s20 }
  0x11   : > { %v275_v11 = vld [vmem:[%s251_s23] sm:$0xff] }
  0x87   : > { %v280_v9 = vpop.permute.xlu0 %279 }
  0x88   : > { %v287_v10 = vrot.slane %v280_v9, %v286_v8 }
  0x8a   : > { %v289_v13 = vmul.f32 %v287_v10, %v275_v11 }
  0x8b   : > { %v294_v12 = vpop.permute.xlu0 %293 }
  0x8c   : > { %v301_v14 = vrot.slane %v294_v12, %v286_v8 }
  0x8e   : > { %v303_v15 = vadd.f32 %v301_v14, %v289_v13 }
  0x90   : > { %304 = vst [vmem:[%s273_s26] sm:$0xff] %v303_v15 }
  0x91 PF: > { %s13_s14 = sadd.s32 1, %s511_s14   ;;  %s578_s12 = smov %s507_s13 }
  0x92   : > { %p10_p5 = scmp.ge.s32.totalorder %s13_s14, 4   ;;  %s579_s13 = smov %s581_s15 }
  0x94   :  { %12 = sbr.rel (!%p10_p5) target bundleno = 2 (0x2), region = 68 }

</bundles_post_ra>
